<compile_context>
chip_gen: v7x
topology: tpu7x:2x2x1
jax: 0.10.0
libtpu: 0.0.40
codegen_flags: <defaults>
</compile_context>

<pallas_src>
import jax
import jax.numpy as jnp
from jax import lax
from jax.experimental import pallas as pl
from jax.experimental.pallas import tpu as pltpu

_EPS = 1e-12          # matches torch.nn.functional.normalize default eps
_TEMP_CLAMP = 4.6     # the module clamps temperature at 4.6 (~= ln(100))


def _round_up(x, m):
    return ((x + m - 1) // m) * m


def _tpu_vmem_capacity_bytes():
    """Best-effort physical VMEM capacity (falls back to 128 MiB)."""
    try:
        info = pltpu.get_tpu_info()
        cap = getattr(info, "vmem_capacity_bytes", None)
        if cap:
            return int(cap)
    except Exception:
        pass
    return 128 << 20


def _make_infonce_kernel(n_real, n_pad, tm, op_dtype):
    needs_mask = (n_pad != n_real)
    n_chunks = n_pad // tm

    def kernel(temp_ref, img_ref, txt_hbm, loss_ref,
               txt_n_ref, stage_ref, dma_sem, m_c_ref, l_c_ref, acc_ref):
        i = pl.program_id(0)
        n_tiles = pl.num_programs(0)

        # scale = exp(clamp(temperature, max=4.6))
        scale = jnp.exp(jnp.minimum(temp_ref[0, 0], _TEMP_CLAMP))

        @pl.when(i == 0)
        def _init():
            # One-time: stream the raw text from HBM in TM-row chunks, normalize
            # each chunk in f32, and store into the persistent VMEM scratch.
            # (No full-size raw text buffer, no full-size f32 temporary.)
            def norm_chunk(c, carry):
                s = pl.multiple_of(c * tm, tm)
                cp = pltpu.make_async_copy(
                    txt_hbm.at[pl.ds(s, tm), :], stage_ref, dma_sem)
                cp.start()
                cp.wait()
                t = stage_ref[...].astype(jnp.float32)
                ss = jnp.sum(t * t, axis=1, keepdims=True)
                inv = jnp.where(ss > _EPS * _EPS, lax.rsqrt(ss), 1.0 / _EPS)
                txt_n_ref[pl.ds(s, tm), :] = (t * inv).astype(op_dtype)
                return carry
            lax.fori_loop(0, n_chunks, norm_chunk, 0)

            m_c_ref[...] = jnp.full_like(m_c_ref, -jnp.inf)
            l_c_ref[...] = jnp.zeros_like(l_c_ref)
            acc_ref[0] = jnp.float32(0.0)   # sum_i (row_lse_i - diag_i)
            acc_ref[1] = jnp.float32(0.0)   # sum_i diag_i

        # Normalize the current image row tile in f32, folding the logit scale in
        # (one O(TM*D) multiply instead of an O(TM*N) pass over the logits).
        img = img_ref[...].astype(jnp.float32)                       # (TM, D)
        ss_i = jnp.sum(img * img, axis=1, keepdims=True)
        inv_i = jnp.where(ss_i > _EPS * _EPS, lax.rsqrt(ss_i), 1.0 / _EPS) * scale
        img_op = (img * inv_i).astype(op_dtype)                      # scale folded in

        # Full logits tile on the MXU.  The "NT" contraction (both operands
        # contract on their last dim) is the MXU-native form used by the
        # reference flash-attention kernels: no per-step rhs transpose.
        logits = lax.dot_general(
            img_op, txt_n_ref[...],
            dimension_numbers=(((1,), (1,)), ((), ())),
            preferred_element_type=jnp.float32)                      # (TM, N)

        # Matching-pair logits via an MXU (TM, TM) diagonal block: numerically
        # consistent with `logits` and cheaper than a (TM, D) VPU dot.  (The
        # block is recomputed from a sublane-aligned ref slice because dynamic
        # lane-slicing of the `logits` value is not portable across Mosaic.)
        start = pl.multiple_of(i * tm, tm)
        blk = lax.dot_general(
            img_op, txt_n_ref[pl.ds(start, tm), :],
            dimension_numbers=(((1,), (1,)), ((), ())),
            preferred_element_type=jnp.float32)                      # (TM, TM)
        rr = lax.broadcasted_iota(jnp.int32, (tm, tm), 0)
        cc = lax.broadcasted_iota(jnp.int32, (tm, tm), 1)
        diag = jnp.sum(jnp.where(rr == cc, blk, 0.0),
                       axis=1, keepdims=True)                        # (TM, 1)

        if needs_mask:
            # Padded image rows / text columns are all-zero => their logits are
            # exactly 0.  Use the unmasked maxima as (loose but valid) LSE
            # shifts and drop padded terms with cheap multiplicative masks.
            col_w = (lax.broadcasted_iota(jnp.int32, (1, n_pad), 1)
                     < n_real).astype(jnp.float32)                   # (1, N)
            row_w = ((i * tm + lax.broadcasted_iota(jnp.int32, (tm, 1), 0))
                     < n_real).astype(jnp.float32)                   # (TM, 1)

        # image -> text: row-wise logsumexp for this tile.
        m_r = jnp.max(logits, axis=1, keepdims=True)                 # (TM, 1)
        p_r = jnp.exp(logits - m_r)
        if needs_mask:
            p_r = p_r * col_w
        lse_r = m_r + jnp.log(jnp.sum(p_r, axis=1, keepdims=True))
        per_row = lse_r - diag
        if needs_mask:
            per_row = per_row * row_w
            diag_sum = jnp.sum(diag * row_w)
        else:
            diag_sum = jnp.sum(diag)
        acc_ref[0] = acc_ref[0] + jnp.sum(per_row)
        acc_ref[1] = acc_ref[1] + diag_sum

        # text -> image: online column-wise logsumexp accumulated across tiles.
        m_prev = m_c_ref[...]
        m_new = jnp.maximum(m_prev, jnp.max(logits, axis=0, keepdims=True))
        p_c = jnp.exp(logits - m_new)
        if needs_mask:
            p_c = p_c * row_w
        l_c_ref[...] = l_c_ref[...] * jnp.exp(m_prev - m_new) + jnp.sum(
            p_c, axis=0, keepdims=True)
        m_c_ref[...] = m_new
        # TODO(synk): the row and column paths each take one exp over the (TM, N)
        # tile; a shared-shift single-exp variant risks over/underflow when the
        # clamped scale (<= e^4.6) meets strongly negative similarities, so it is
        # deferred pending a bundle-dump check that the EUP actually saturates.

        @pl.when(i == n_tiles - 1)
        def _finalize():
            lse_c = m_c_ref[...] + jnp.log(l_c_ref[...])             # (1, N)
            if needs_mask:
                cid = lax.broadcasted_iota(jnp.int32, (1, n_pad), 1)
                lse_c_sum = jnp.sum(jnp.where(cid < n_real, lse_c, 0.0))
            else:
                lse_c_sum = jnp.sum(lse_c)
            loss_i2t = acc_ref[0]                  # sum_i (row_lse - diag)
            loss_t2i = lse_c_sum - acc_ref[1]      # sum_j col_lse - sum diag
            # CrossEntropyLoss(mean) for both directions, then averaged.
            loss_ref[0, 0] = (loss_i2t + loss_t2i) * (0.5 / n_real)

    return kernel


def infonce_loss(image_embeds, text_embeds, temperature, *, tm=None):
    """image_embeds, text_embeds: (N, D). temperature: scalar log(1/temp) parameter."""
    n, d = image_embeds.shape
    assert text_embeds.shape == (n, d), "image/text embedding shapes must match"

    in_dtype = image_embeds.dtype
    # bf16 MXU operands when inputs are bf16 (v6e/v7x native); softmax math stays f32.
    op_dtype = jnp.bfloat16 if in_dtype == jnp.bfloat16 else jnp.float32

    vmem_cap = _tpu_vmem_capacity_bytes()

    d_pad = _round_up(max(d, 1), 128)
    if tm is None:
        # v7x (64 MiB VMEM/TC): TM=128 keeps the (TM, N) f32 temporaries in budget;
        # v5e/v6e (128 MiB): TM=256.
        default_tm = 128 if vmem_cap <= (64 << 20) else 256
        tm = default_tm if n >= default_tm else _round_up(n, 8)
    tm = max(8, _round_up(int(tm), 8))
    n_pad = _round_up(n, tm)
    n_tiles = n_pad // tm

    if d_pad != d or n_pad != n:
        image_embeds = jnp.pad(image_embeds, ((0, n_pad - n), (0, d_pad - d)))
        text_embeds = jnp.pad(text_embeds, ((0, n_pad - n), (0, d_pad - d)))

    temp = jnp.reshape(temperature.astype(jnp.float32), (1, 1))

    # Device-aware VMEM budget (no blanket 2x, raw text counted as one staging chunk).
    in_bytes = jnp.dtype(in_dtype).itemsize
    op_bytes = jnp.dtype(op_dtype).itemsize
    est = (2 * tm * d_pad * in_bytes       # double-buffered image row tiles
           + n_pad * d_pad * op_bytes      # normalized text scratch (single copy)
           + tm * d_pad * in_bytes         # raw-text DMA staging chunk
           + 2 * 8 * n_pad * 4             # column max / sum-exp scratch (sublane-padded)
           + 3 * tm * n_pad * 4            # logits tile + exp temporaries
           + 3 * tm * d_pad * 4            # f32 image-tile temporaries
           + 2 * tm * tm * 4)              # diagonal-block temporaries
    vmem_limit = est + est // 4 + (2 << 20)
    vmem_limit = int(min(max(vmem_limit, 32 << 20), (vmem_cap * 85) // 100))

    kernel = _make_infonce_kernel(n, n_pad, tm, op_dtype)

    out = pl.pallas_call(
        kernel,
        out_shape=jax.ShapeDtypeStruct((1, 1), jnp.float32),
        grid_spec=pltpu.PrefetchScalarGridSpec(
            num_scalar_prefetch=0,
            grid=(n_tiles,),
            in_specs=[
                pl.BlockSpec(memory_space=pltpu.MemorySpace.SMEM),   # temperature
                pl.BlockSpec((tm, d_pad), lambda i: (i, 0)),         # image row tile
                pl.BlockSpec(memory_space=pl.ANY),                   # raw text stays in HBM
            ],
            out_specs=pl.BlockSpec(memory_space=pltpu.MemorySpace.SMEM),
            scratch_shapes=[
                pltpu.VMEM((n_pad, d_pad), op_dtype),    # normalized text (persistent)
                pltpu.VMEM((tm, d_pad), in_dtype),       # raw-text DMA staging chunk
                pltpu.SemaphoreType.DMA(()),             # staging-chunk DMA semaphore
                pltpu.VMEM((1, n_pad), jnp.float32),     # running column max
                pltpu.VMEM((1, n_pad), jnp.float32),     # running column sum-exp
                pltpu.SMEM((2,), jnp.float32),           # row-loss / diag accumulators
            ],
        ),
        # Row-tile axis carries the column-LSE accumulation -> must stay "arbitrary".
        # TODO(synk): v7x dual-TC: split the grid into (2, n_tiles//2) with a leading
        # "parallel" axis, emit per-core column m/l partials + scalar partials as
        # outputs and merge in the wrapper; a column-tile axis (TN ~ 1-2k) would also
        # remove the full-N text residency requirement for CLIP-sized global batches.
        compiler_params=pltpu.CompilerParams(
            dimension_semantics=("arbitrary",),
            vmem_limit_bytes=vmem_limit,
        ),
    )(temp, image_embeds, text_embeds)
    return out[0, 0]


def infonce_loss_ref(image_embeds, text_embeds, temperature):
    """Pure-JAX reference (F.normalize semantics, clamp at 4.6, symmetric CE)."""
    img = image_embeds.astype(jnp.float32)
    txt = text_embeds.astype(jnp.float32)
    img_n = img / jnp.maximum(jnp.linalg.norm(img, axis=1, keepdims=True), _EPS)
    txt_n = txt / jnp.maximum(jnp.linalg.norm(txt, axis=1, keepdims=True), _EPS)
    logits = img_n @ txt_n.T * jnp.exp(
        jnp.minimum(temperature.astype(jnp.float32), _TEMP_CLAMP))
    n = logits.shape[0]
    labels = jnp.arange(n)
    log_p_r = logits - jax.nn.logsumexp(logits, axis=1, keepdims=True)
    log_p_c = logits - jax.nn.logsumexp(logits, axis=0, keepdims=True)
    l_i2t = -jnp.mean(log_p_r[labels, labels])
    l_t2i = -jnp.mean(log_p_c[labels, labels])
    return (l_i2t + l_t2i) / 2.0


if __name__ == "__main__":
    # TODO(synk): the PyTorch module prints embedding norms / temperature; those
    # side-effect prints are omitted (pl.debug_print would not change the result).
    initial_temp = 0.07
    temperature = jnp.log(jnp.array(1.0 / initial_temp, dtype=jnp.float32))

    key = jax.random.PRNGKey(0)
    cases = [
        dict(n=8, d=32, tm=None),    # primary small case: single tile, no N padding
        dict(n=12, d=40, tm=None),   # exercises N/D padding + row/col masking
        dict(n=32, d=64, tm=8),      # multi-tile grid: online column LSE + chunked init
    ]
    for c in cases:
        key, k_img, k_txt = jax.random.split(key, 3)
        img = jax.random.normal(k_img, (c["n"], c["d"]), dtype=jnp.float32)
        txt = jax.random.normal(k_txt, (c["n"], c["d"]), dtype=jnp.float32)

        loss = infonce_loss(img, txt, temperature, tm=c["tm"])
        loss = jax.block_until_ready(loss)

        ref = infonce_loss_ref(img, txt, temperature)
        assert jnp.allclose(loss, ref, rtol=1e-4, atol=1e-4), (c, loss, ref)

    print("KERNEL_OK")
</pallas_src>

<mosaic_0001>
module attributes {stable_mosaic.version = 11 : i64} {
  func.func @kernel(%arg0: i32, %arg1: memref<1x1xf32, #tpu.memory_space<smem>>, %arg2: memref<8x128xf32, #tpu.memory_space<vmem>>, %arg3: memref<8x128xf32, #tpu.memory_space<any>>, %arg4: memref<1x1xf32, #tpu.memory_space<smem>>, %arg5: memref<8x128xf32, #tpu.memory_space<vmem>>, %arg6: memref<8x128xf32, #tpu.memory_space<vmem>>, %arg7: memref<!tpu.dma_semaphore, #tpu.memory_space<semaphore_mem>>, %arg8: memref<1x8xf32, #tpu.memory_space<vmem>>, %arg9: memref<1x8xf32, #tpu.memory_space<vmem>>, %arg10: memref<2xf32, #tpu.memory_space<smem>>) attributes {dimension_semantics = [#tpu.dimension_semantics<arbitrary>], iteration_bounds = array<i64: 1>, scalar_prefetch = 0 : i64, scratch_operands = 6 : i64, tpu.core_type = #tpu.core_type<tc>, window_params = [{transform_indices = @transform_0, window_bounds = array<i64: 1, 1>}, {transform_indices = @transform_1, window_bounds = array<i64: 8, 128>}, {}, {transform_indices = @transform_3, window_bounds = array<i64: 1, 1>}]} {
    %c0 = arith.constant 0 : index
    %c0_0 = arith.constant 0 : index
    %0 = memref.load %arg1[%c0, %c0_0] : memref<1x1xf32, #tpu.memory_space<smem>>
    %cst = arith.constant 4.600000e+00 : f32
    %1 = arith.minimumf %0, %cst : f32
    %2 = math.exp %1 : f32
    %c0_i32 = arith.constant 0 : i32
    %3 = arith.cmpi eq, %arg0, %c0_i32 : i32
    %4 = arith.extui %3 : i1 to i32
    %c0_i32_1 = arith.constant 0 : i32
    %5 = arith.cmpi ne, %4, %c0_i32_1 : i32
    scf.if %5 {
      %c0_i32_33 = arith.constant 0 : i32
      %c8_i32_34 = arith.constant 8 : i32
      %76 = arith.muli %c0_i32_33, %c8_i32_34 : i32
      %77 = tpu.assume_multiple %76, 8 : i32
      %c0_i32_35 = arith.constant 0 : i32
      %78 = tpu.memref_slice %arg3[%77, %c0_i32_35] : memref<8x128xf32, #tpu.memory_space<any>> -> memref<8x128xf32, #tpu.memory_space<any>>
      tpu.enqueue_dma source(%78 : memref<8x128xf32, #tpu.memory_space<any>>) target(%arg6 : memref<8x128xf32, #tpu.memory_space<vmem>>) target_semaphore(%arg7 : memref<!tpu.dma_semaphore, #tpu.memory_space<semaphore_mem>>)
      %c0_i32_36 = arith.constant 0 : i32
      %79 = tpu.memref_slice %arg3[%77, %c0_i32_36] : memref<8x128xf32, #tpu.memory_space<any>> -> memref<8x128xf32, #tpu.memory_space<any>>
      tpu.wait_dma2 semaphore(%arg7 : memref<!tpu.dma_semaphore, #tpu.memory_space<semaphore_mem>>) src(%79 : memref<8x128xf32, #tpu.memory_space<any>>) dst(%arg6 : memref<8x128xf32, #tpu.memory_space<vmem>>)
      %c0_37 = arith.constant 0 : index
      %c0_38 = arith.constant 0 : index
      %80 = vector.load %arg6[%c0_37, %c0_38] : memref<8x128xf32, #tpu.memory_space<vmem>>, vector<8x128xf32>
      %81 = arith.mulf %80, %80 : vector<8x128xf32>
      %cst_39 = arith.constant dense<0.000000e+00> : vector<8xf32>
      %82 = vector.multi_reduction <add>, %81, %cst_39 [1] : vector<8x128xf32> to vector<8xf32>
      %83 = vector.shape_cast %82 : vector<8xf32> to vector<8x1xf32>
      %cst_40 = arith.constant 1.000000e-24 : f32
      %84 = vector.broadcast %cst_40 : f32 to vector<8x1xf32>
      %85 = arith.cmpf ogt, %83, %84 : vector<8x1xf32>
      %86 = math.rsqrt %83 : vector<8x1xf32>
      %cst_41 = arith.constant 9.99999995E+11 : f32
      %87 = vector.broadcast %cst_41 : f32 to vector<8x1xf32>
      %88 = arith.select %85, %86, %87 : vector<8x1xi1>, vector<8x1xf32>
      %89 = vector.broadcast %88 : vector<8x1xf32> to vector<8x128xf32>
      %90 = arith.mulf %80, %89 : vector<8x128xf32>
      %91 = arith.index_cast %77 : i32 to index
      %c0_42 = arith.constant 0 : index
      %92 = vector.load %arg5[%91, %c0_42] : memref<8x128xf32, #tpu.memory_space<vmem>>, vector<8x128xf32>
      tpu.vector_store %arg5[%91, %c0_42], %90 {strides = array<i32>} : memref<8x128xf32, #tpu.memory_space<vmem>>, vector<8x128xf32>,
      %c1_i32 = arith.constant 1 : i32
      %cst_43 = arith.constant 0xFF800000 : f32
      %93 = vector.broadcast %cst_43 : f32 to vector<1x8xf32>
      %c0_44 = arith.constant 0 : index
      %c0_45 = arith.constant 0 : index
      %94 = vector.load %arg8[%c0_44, %c0_45] : memref<1x8xf32, #tpu.memory_space<vmem>>, vector<1x8xf32>
      tpu.vector_store %arg8[%c0_44, %c0_45], %93 {strides = array<i32>} : memref<1x8xf32, #tpu.memory_space<vmem>>, vector<1x8xf32>,
      %cst_46 = arith.constant 0.000000e+00 : f32
      %95 = vector.broadcast %cst_46 : f32 to vector<1x8xf32>
      %c0_47 = arith.constant 0 : index
      %c0_48 = arith.constant 0 : index
      %96 = vector.load %arg9[%c0_47, %c0_48] : memref<1x8xf32, #tpu.memory_space<vmem>>, vector<1x8xf32>
      tpu.vector_store %arg9[%c0_47, %c0_48], %95 {strides = array<i32>} : memref<1x8xf32, #tpu.memory_space<vmem>>, vector<1x8xf32>,
      %cst_49 = arith.constant 0.000000e+00 : f32
      %c0_50 = arith.constant 0 : index
      %97 = memref.load %arg10[%c0_50] : memref<2xf32, #tpu.memory_space<smem>>
      memref.store %cst_49, %arg10[%c0_50] : memref<2xf32, #tpu.memory_space<smem>>
      %cst_51 = arith.constant 0.000000e+00 : f32
      %c1_52 = arith.constant 1 : index
      %98 = memref.load %arg10[%c1_52] : memref<2xf32, #tpu.memory_space<smem>>
      memref.store %cst_51, %arg10[%c1_52] : memref<2xf32, #tpu.memory_space<smem>>
    } else {
    }
    %c0_2 = arith.constant 0 : index
    %c0_3 = arith.constant 0 : index
    %6 = vector.load %arg2[%c0_2, %c0_3] : memref<8x128xf32, #tpu.memory_space<vmem>>, vector<8x128xf32>
    %7 = arith.mulf %6, %6 : vector<8x128xf32>
    %cst_4 = arith.constant dense<0.000000e+00> : vector<8xf32>
    %8 = vector.multi_reduction <add>, %7, %cst_4 [1] : vector<8x128xf32> to vector<8xf32>
    %9 = vector.shape_cast %8 : vector<8xf32> to vector<8x1xf32>
    %cst_5 = arith.constant 1.000000e-24 : f32
    %10 = vector.broadcast %cst_5 : f32 to vector<8x1xf32>
    %11 = arith.cmpf ogt, %9, %10 : vector<8x1xf32>
    %12 = math.rsqrt %9 : vector<8x1xf32>
    %cst_6 = arith.constant 9.99999995E+11 : f32
    %13 = vector.broadcast %cst_6 : f32 to vector<8x1xf32>
    %14 = arith.select %11, %12, %13 : vector<8x1xi1>, vector<8x1xf32>
    %15 = vector.broadcast %2 : f32 to vector<8x1xf32>
    %16 = arith.mulf %14, %15 : vector<8x1xf32>
    %17 = vector.broadcast %16 : vector<8x1xf32> to vector<8x128xf32>
    %18 = arith.mulf %6, %17 : vector<8x128xf32>
    %c0_7 = arith.constant 0 : index
    %c0_8 = arith.constant 0 : index
    %19 = vector.load %arg5[%c0_7, %c0_8] : memref<8x128xf32, #tpu.memory_space<vmem>>, vector<8x128xf32>
    %cst_9 = arith.constant dense<0.000000e+00> : vector<8x8xf32>
    %20 = tpu.matmul %18, %19, %cst_9 {dimension_numbers = #tpu.dot_dimension_numbers<[1], [1], [0], [0], [0, 0, 1, 0], [], []>} : vector<8x128xf32>, vector<8x128xf32>, vector<8x8xf32> -> vector<8x8xf32>
    %c8_i32 = arith.constant 8 : i32
    %21 = arith.muli %arg0, %c8_i32 : i32
    %22 = tpu.assume_multiple %21, 8 : i32
    %23 = arith.index_cast %22 : i32 to index
    %c0_10 = arith.constant 0 : index
    %24 = vector.load %arg5[%23, %c0_10] : memref<8x128xf32, #tpu.memory_space<vmem>>, vector<8x128xf32>
    %cst_11 = arith.constant dense<0.000000e+00> : vector<8x8xf32>
    %25 = tpu.matmul %18, %24, %cst_11 {dimension_numbers = #tpu.dot_dimension_numbers<[1], [1], [0], [0], [0, 0, 1, 0], [], []>} : vector<8x128xf32>, vector<8x128xf32>, vector<8x8xf32> -> vector<8x8xf32>
    %26 = tpu.iota {dimensions = array<i32: 0>} : vector<8x8xi32>
    %27 = tpu.iota {dimensions = array<i32: 1>} : vector<8x8xi32>
    %28 = arith.cmpi eq, %26, %27 : vector<8x8xi32>
    %cst_12 = arith.constant 0.000000e+00 : f32
    %29 = vector.broadcast %cst_12 : f32 to vector<8x8xf32>
    %30 = arith.select %28, %25, %29 : vector<8x8xi1>, vector<8x8xf32>
    %cst_13 = arith.constant dense<0.000000e+00> : vector<8xf32>
    %31 = vector.multi_reduction <add>, %30, %cst_13 [1] : vector<8x8xf32> to vector<8xf32>
    %32 = vector.shape_cast %31 : vector<8xf32> to vector<8x1xf32>
    %cst_14 = arith.constant dense<0xFF800000> : vector<8xf32>
    %33 = vector.multi_reduction <maximumf>, %20, %cst_14 [1] : vector<8x8xf32> to vector<8xf32>
    %34 = vector.shape_cast %33 : vector<8xf32> to vector<8x1xf32>
    %35 = vector.broadcast %34 : vector<8x1xf32> to vector<8x8xf32>
    %36 = arith.subf %20, %35 : vector<8x8xf32>
    %37 = math.exp %36 : vector<8x8xf32>
    %cst_15 = arith.constant dense<0.000000e+00> : vector<8xf32>
    %38 = vector.multi_reduction <add>, %37, %cst_15 [1] : vector<8x8xf32> to vector<8xf32>
    %39 = vector.shape_cast %38 : vector<8xf32> to vector<8x1xf32>
    %40 = math.log %39 : vector<8x1xf32>
    %41 = arith.addf %34, %40 : vector<8x1xf32>
    %42 = arith.subf %41, %32 : vector<8x1xf32>
    %43 = vector.shape_cast %32 : vector<8x1xf32> to vector<1x8x1xf32>
    %cst_16 = arith.constant dense<0.000000e+00> : vector<1xf32>
    %44 = vector.multi_reduction <add>, %43, %cst_16 [1, 2] : vector<1x8x1xf32> to vector<1xf32>
    %45 = vector.shape_cast %44 : vector<1xf32> to vector<1x1x1xf32>
    %46 = vector.extract %45[0, 0, 0] : f32 from vector<1x1x1xf32>
    %c0_17 = arith.constant 0 : index
    %47 = memref.load %arg10[%c0_17] : memref<2xf32, #tpu.memory_space<smem>>
    %48 = vector.shape_cast %42 : vector<8x1xf32> to vector<1x8x1xf32>
    %cst_18 = arith.constant dense<0.000000e+00> : vector<1xf32>
    %49 = vector.multi_reduction <add>, %48, %cst_18 [1, 2] : vector<1x8x1xf32> to vector<1xf32>
    %50 = vector.shape_cast %49 : vector<1xf32> to vector<1x1x1xf32>
    %51 = vector.extract %50[0, 0, 0] : f32 from vector<1x1x1xf32>
    %52 = arith.addf %47, %51 : f32
    %c0_19 = arith.constant 0 : index
    %53 = memref.load %arg10[%c0_19] : memref<2xf32, #tpu.memory_space<smem>>
    memref.store %52, %arg10[%c0_19] : memref<2xf32, #tpu.memory_space<smem>>
    %c1 = arith.constant 1 : index
    %54 = memref.load %arg10[%c1] : memref<2xf32, #tpu.memory_space<smem>>
    %55 = arith.addf %54, %46 : f32
    %c1_20 = arith.constant 1 : index
    %56 = memref.load %arg10[%c1_20] : memref<2xf32, #tpu.memory_space<smem>>
    memref.store %55, %arg10[%c1_20] : memref<2xf32, #tpu.memory_space<smem>>
    %c0_21 = arith.constant 0 : index
    %c0_22 = arith.constant 0 : index
    %57 = vector.load %arg8[%c0_21, %c0_22] : memref<1x8xf32, #tpu.memory_space<vmem>>, vector<1x8xf32>
    %cst_23 = arith.constant dense<0xFF800000> : vector<8xf32>
    %58 = vector.multi_reduction <maximumf>, %20, %cst_23 [0] : vector<8x8xf32> to vector<8xf32>
    %59 = vector.shape_cast %58 : vector<8xf32> to vector<1x8xf32>
    %60 = arith.maximumf %57, %59 : vector<1x8xf32>
    %61 = vector.broadcast %60 : vector<1x8xf32> to vector<8x8xf32>
    %62 = arith.subf %20, %61 : vector<8x8xf32>
    %63 = math.exp %62 : vector<8x8xf32>
    %c0_24 = arith.constant 0 : index
    %c0_25 = arith.constant 0 : index
    %64 = vector.load %arg9[%c0_24, %c0_25] : memref<1x8xf32, #tpu.memory_space<vmem>>, vector<1x8xf32>
    %65 = arith.subf %57, %60 : vector<1x8xf32>
    %66 = math.exp %65 : vector<1x8xf32>
    %67 = arith.mulf %64, %66 : vector<1x8xf32>
    %cst_26 = arith.constant dense<0.000000e+00> : vector<8xf32>
    %68 = vector.multi_reduction <add>, %63, %cst_26 [0] : vector<8x8xf32> to vector<8xf32>
    %69 = vector.shape_cast %68 : vector<8xf32> to vector<1x8xf32>
    %70 = arith.addf %67, %69 : vector<1x8xf32>
    %c0_27 = arith.constant 0 : index
    %c0_28 = arith.constant 0 : index
    %71 = vector.load %arg9[%c0_27, %c0_28] : memref<1x8xf32, #tpu.memory_space<vmem>>, vector<1x8xf32>
    tpu.vector_store %arg9[%c0_27, %c0_28], %70 {strides = array<i32>} : memref<1x8xf32, #tpu.memory_space<vmem>>, vector<1x8xf32>,
    %c0_29 = arith.constant 0 : index
    %c0_30 = arith.constant 0 : index
    %72 = vector.load %arg8[%c0_29, %c0_30] : memref<1x8xf32, #tpu.memory_space<vmem>>, vector<1x8xf32>
    tpu.vector_store %arg8[%c0_29, %c0_30], %60 {strides = array<i32>} : memref<1x8xf32, #tpu.memory_space<vmem>>, vector<1x8xf32>,
    %c0_i32_31 = arith.constant 0 : i32
    %73 = arith.cmpi eq, %arg0, %c0_i32_31 : i32
    %74 = arith.extui %73 : i1 to i32
    %c0_i32_32 = arith.constant 0 : i32
    %75 = arith.cmpi ne, %74, %c0_i32_32 : i32
    scf.if %75 {
      %c0_33 = arith.constant 0 : index
      %c0_34 = arith.constant 0 : index
      %76 = vector.load %arg8[%c0_33, %c0_34] : memref<1x8xf32, #tpu.memory_space<vmem>>, vector<1x8xf32>
      %c0_35 = arith.constant 0 : index
      %c0_36 = arith.constant 0 : index
      %77 = vector.load %arg9[%c0_35, %c0_36] : memref<1x8xf32, #tpu.memory_space<vmem>>, vector<1x8xf32>
      %78 = math.log %77 : vector<1x8xf32>
      %79 = arith.addf %76, %78 : vector<1x8xf32>
      %80 = vector.shape_cast %79 : vector<1x8xf32> to vector<1x1x8xf32>
      %cst_37 = arith.constant dense<0.000000e+00> : vector<1xf32>
      %81 = vector.multi_reduction <add>, %80, %cst_37 [1, 2] : vector<1x1x8xf32> to vector<1xf32>
      %82 = vector.shape_cast %81 : vector<1xf32> to vector<1x1x1xf32>
      %83 = vector.extract %82[0, 0, 0] : f32 from vector<1x1x1xf32>
      %c0_38 = arith.constant 0 : index
      %84 = memref.load %arg10[%c0_38] : memref<2xf32, #tpu.memory_space<smem>>
      %c1_39 = arith.constant 1 : index
      %85 = memref.load %arg10[%c1_39] : memref<2xf32, #tpu.memory_space<smem>>
      %86 = arith.subf %83, %85 : f32
      %87 = arith.addf %84, %86 : f32
      %cst_40 = arith.constant 6.250000e-02 : f32
      %88 = arith.mulf %87, %cst_40 : f32
      %c0_41 = arith.constant 0 : index
      %c0_42 = arith.constant 0 : index
      %89 = memref.load %arg4[%c0_41, %c0_42] : memref<1x1xf32, #tpu.memory_space<smem>>
      memref.store %88, %arg4[%c0_41, %c0_42] : memref<1x1xf32, #tpu.memory_space<smem>>
    } else {
    }
    return
  }
  func.func @transform_0(%arg0: i32) -> (i32, i32) {
    %c0_i32 = arith.constant 0 : i32
    %c0_i32_0 = arith.constant 0 : i32
    %c0_i32_1 = arith.constant 0 : i32
    return %c0_i32, %c0_i32_0 : i32, i32
  }
  func.func @transform_1(%arg0: i32) -> (i32, i32) {
    %c0_i32 = arith.constant 0 : i32
    %c0_i32_0 = arith.constant 0 : i32
    return %arg0, %c0_i32 : i32, i32
  }
  func.func @transform_3(%arg0: i32) -> (i32, i32) {
    %c0_i32 = arith.constant 0 : i32
    %c0_i32_0 = arith.constant 0 : i32
    %c0_i32_1 = arith.constant 0 : i32
    return %c0_i32, %c0_i32_0 : i32, i32
  }
}

</mosaic_0001>

<bundles_post_ra>
// kernel: tpu_custom_call.1
= control target key start
LH: loop header
LB: loop body
LE: loop exit
PB: predicated region body
PF: predicated region fallthrough
CT: control target
= control target key end

     0   :  { %9 = vsyncpa [#allocation10], 0  ;;  %s535_s0 = inlined_call_operand.<no memory space> [shape: f32[1,1], index: 0, kind: input, shape index: {}]   ;;  %s536_s1 = inlined_call_operand.hbm [shape: f32[8,128], index: 1, kind: input, shape index: {}]   ;;  %s537_s2 = inlined_call_operand.hbm [shape: f32[8,128], index: 2, kind: input, shape index: {}]   ;;  %s538_s3 = inlined_call_operand.hbm [shape: f32[1,1], index: 3, kind: output, shape index: {}]  }
   0x1   :  { %10 = vsyncpa [#allocation11], 0  ;;  %s458_s12 = smov [#allocation9]   ;;  %s398_s16 = scalar_lea.hbm %s536_s1, 128 }
   0x2   :  { %s19_s13 = sshll.u32 %s458_s12, 4  ;;  %p399_p0 = scmp.ne.s32.totalorder %s536_s1, %s398_s16  ;;  %s20_s13 = int_to_ptr.vmem [resolvable:$true] %s19_s13 }
   0x3   :  { %p402_p1 = scmp.lt.u32.totalorder %s398_s16, %s536_s1 }
   0x5   :  { %p404_p2 = pnand %p402_p1, %p399_p0 }
   0x7   :  { %407 = shalt.err (!%p404_p2)
}
   0x8   :  { %s408_s21 = scalar_lea.vmem %s20_s13, 128  ;;  %p413_p4 = scmp.lt.s32.totalorder %s20_s13, %s20_s13 }
   0x9   :  { %p409_p3 = scmp.ne.s32.totalorder %s20_s13, %s408_s21  ;;  %p414_p5 = scmp.lt.s32.totalorder %s408_s21, %s408_s21 }
   0xb   :  { %p415_p6 = por %p414_p5, %p413_p4 }
   0xd   :  { %p416_p7 = pnand %p415_p6, %p409_p3 }
   0xf   :  { %419 = shalt.err (!%p416_p7)
}
  0x10   :  { %22 = dma.hbm_to_vmem [thread:$0]  %s536_s1, 128, %s20_s13, [#allocation10]  }
  0x11   :  { %452 = dma.done.wait [#allocation10], 128  }
  0x12   :  { %453 = vsyncadd [#allocation10], 4294967168  ;;  %s459_s24 = smov 4.6   ;;  %s460_s28 = smov [#allocation3]  }
  0x13   :  { %s27_s27 = smin.f32 %s459_s24, %s535_s0  ;;  %s43_s29 = sshll.u32 %s460_s28, 4  ;;  %s44_s29 = int_to_ptr.vmem [resolvable:$true] %s43_s29 }
  0x14   :  { %v28_v0 = vstv %s27_s27  ;;  %s420_s5 = scalar_lea.hbm %s537_s2, 128 }
  0x15   :  { %v29_v1 = vmul.f32 1.442695, %v28_v0  ;;  %p421_p8 = scmp.ne.s32.totalorder %s537_s2, %s420_s5  ;;  %p424_p9 = scmp.lt.u32.totalorder %s420_s5, %s537_s2 }
  0x17   :  { %p426_p10 = pnand %p424_p9, %p421_p8 }
  0x19   :  { %429 = shalt.err (!%p426_p10)  }
  0x1a   :  { %s430_s0 = scalar_lea.vmem %s44_s29, 128  ;;  %p435_p12 = scmp.lt.s32.totalorder %s44_s29, %s44_s29 }
  0x1b   :  { %p431_p11 = scmp.ne.s32.totalorder %s44_s29, %s430_s0  ;;  %p436_p13 = scmp.lt.s32.totalorder %s430_s0, %s430_s0 }
  0x1d   :  { %p437_p0 = por %p436_p13, %p435_p12 }
  0x1f   :  { %p438_p1 = pnand %p437_p0, %p431_p11 }
  0x21   :  { %441 = shalt.err (!%p438_p1)  }
  0x22   :  { %46 = dma.hbm_to_vmem [thread:$0]  %s537_s2, 128, %s44_s29, [#allocation4]  ;;  %382 = vpow2.f32 %v29_v1 }
  0x2c   :  { %v383_v2 = vpop.eup %382 }
  0x2d   :  { %367 = vpush %v383_v2 }
  0x5e   :  { %s368_s11 = spop %367 }
  0x5f   :  { %454 = dma.done.wait [#allocation4], 128 }
  0x60   :  { %455 = vsyncadd [#allocation4], 4294967168  ;;  %v50_v3 = vld [vmem:[#allocation3] sm:$0xff]  ;;  %v66_v4 = vld [vmem:[#allocation9] sm:$0xff]  ;;  %v461_v7 = vmov 0.0   ;;  %vm462_vm0 = vmmov 0   ;;  %v73_v13 = vstv %s368_s11  ;;  %v220_v19 = vlaneseq }
  0x61   :  { %v51_v5 = vmul.f32 %v50_v3, %v50_v3  ;;  %v67_v6 = vmul.f32 %v66_v4, %v66_v4  ;;  %357 = vmatprep.subr.mxu0 %v461_v7  ;;  %362 = vmatprep.subr.mxu1 %v461_v7  ;;  %vm59_vm3 = vcmask 57344   ;;  %v463_v18 = vmov -inf   ;;  %s442_s19 = scalar_lea.hbm %s538_s3, 16 }
  0x62   :  { %359 = vmatprep.mubr.msk.f32.mxu0 %vm462_vm0, %v461_v7  ;;  %364 = vmatprep.mubr.msk.f32.mxu1 %vm462_vm0, %v461_v7  ;;  %60 = vst.msk [vmem:[#allocation5] sm:$0x1] %vm59_vm3, %v463_v18  ;;  %61 = vst.msk [vmem:[#allocation6] sm:$0x1] %vm59_vm3, %v461_v7  ;;  %v221_v20 = vshrl.u32 %v220_v19, 7  ;;  %v223_v21 = vand.u32 127, %v220_v19  ;;  %p443_p2 = scmp.ne.s32.totalorder %s538_s3, %s442_s19  ;;  %p446_p3 = scmp.lt.u32.totalorder %s442_s19, %s538_s3 }
  0x63   :  { %52 = vadd.xlane.f32.xlu0 %v51_v5  ;;  %vm226_vm5 = vcmask 64512   ;;  %vm243_vm6 = vcmask 7168  }
  0x64   :  { %vm224_vm4 = vcmp.eq.s32.totalorder %v221_v20, %v223_v21  ;;  %v283_v35 = vsub.s32 0, %v221_v20  ;;  %p448_p4 = pnand %p446_p3, %p443_p2 }
  0x67   :  { %68 = vadd.xlane.f32.xlu0 %v67_v6 }
  0x69   :  { %v272_v34 = vld [vmem:[#allocation5] sm:$0x1]  ;;  %v289_v50 = vld [vmem:[#allocation6] sm:$0x1] }
  0xf0   :  { %v53_v8 = vpop.xlane.xlu0 %52 }
  0xf1   :  { %384 = vrsqrt.f32 %v53_v8  ;;  %vm54_vm1 = vcmp.gt.f32.partialorder %v53_v8, 1e-24 }
  0xf4   :  { %v69_v9 = vpop.xlane.xlu0 %68 }
  0xf5   :  { %386 = vrsqrt.f32 %v69_v9  ;;  %vm70_vm2 = vcmp.gt.f32.partialorder %v69_v9, 1e-24 }
  0xfb   :  { %v385_v10 = vpop.eup %384 }
  0xfc   :  { %v56_v11 = vsel %vm54_vm1, %v385_v10, 1e+12 }
  0xfd   :  { %v57_v12 = vmul.f32 %v56_v11, %v50_v3 }
  0xff   :  { %v387_v14 = vpop.eup %386  ;;  %358 = vmatpush3.xpose.msra.mxu0 %v57_v12  ;;  %363 = vmatpush3.xpose.msra.mxu1 %v57_v12 }
 0x100   :  { %v72_v15 = vsel %vm70_vm2, %v387_v14, 1e+12 }
 0x101   :  { %v74_v16 = vmul.f32 %v73_v13, %v72_v15 }
 0x103   :  { %v75_v17 = vmul.f32 %v74_v16, %v66_v4 }
 0x105   :  { %360 = vmatmul.mubr.f32.vlgmr.msra.gmra.mrb[0].mxu0 %v75_v17  ;;  %365 = vmatmul.mubr.f32.vlgmr.msra.gmra.mrb[0].mxu1 %v75_v17 }
 0x1d8   :  { %v143_v22 = vpop.f32.mrb[0].mxu0  ;;  %v216_v23 = vpop.f32.mrb[0].mxu1 }
 0x1d9   :  { %v225_v24 = vsel %vm224_vm4, %v216_v23, 0.0  ;;  %v361_v25 = vpop.f32.mrb[1].mxu0  ;;  %v366_v26 = vpop.f32.mrb[1].mxu1  ;;  %v230_v27 = vsel %vm226_vm5, %v143_v22, -inf }
 0x1da   :  { %231 = vmax.xlane.f32.xlu1 %v230_v27  ;;  %v273_v28 = vrot.slane %v230_v27, 4  ;;  %v227_v29 = vsel %vm226_vm5, %v225_v24, 0.0 }
 0x1db   :  { %228 = vadd.xlane.f32.xlu0 %v227_v29 }
 0x1dc   :  { %v274_v30 = vmax.f32 %v230_v27, %v273_v28 }
 0x1de   :  { %v275_v31 = vrot.slane %v274_v30, 2 }
 0x1e0   :  { %v276_v32 = vmax.f32 %v274_v30, %v275_v31 }
 0x1e2   :  { %v277_v33 = vrot.slane %v276_v32, 1 }
 0x1e4   :  { %v278_v36 = vmax.f32 %v276_v32, %v277_v33 }
 0x1e6   :  { %v279_v37 = vmax.f32 %v272_v34, %v278_v36 }
 0x1e8   :  { %v284_v38 = vrot.slane %v279_v37, %v283_v35  ;;  %304 = vst.msk [vmem:[#allocation5] sm:$0x1] %vm59_vm3, %v279_v37  ;;  %v290_v41 = vsub.f32 %v272_v34, %v279_v37 }
 0x1ea   :  { %v286_v39 = vsub.f32 %v143_v22, %v284_v38  ;;  %v291_v42 = vmul.f32 1.442695, %v290_v41 }
 0x1ec   :  { %v287_v40 = vmul.f32 1.442695, %v286_v39 }
 0x1ee   :  { %388 = vpow2.f32 %v287_v40 }
 0x1ef   :  { %390 = vpow2.f32 %v291_v42  ;;  %v308_v0 = vld [vmem:[#allocation5] sm:$0x1] }
 0x1f8   :  { %v389_v43 = vpop.eup %388 }
 0x1f9   :  { %v294_v44 = vsel %vm226_vm5, %v389_v43, 0.0  ;;  %v391_v49 = vpop.eup %390 }
 0x1fa   :  { %v295_v45 = vrot.slane %v294_v44, 4  ;;  %v293_v53 = vmul.f32 %v391_v49, %v289_v50 }
 0x1fc   :  { %v296_v46 = vadd.f32 %v295_v45, %v294_v44 }
 0x1fe   :  { %v297_v47 = vrot.slane %v296_v46, 2 }
 0x200   :  { %v298_v48 = vadd.f32 %v297_v47, %v296_v46 }
 0x202   :  { %v299_v51 = vrot.slane %v298_v48, 1 }
 0x204   :  { %v300_v52 = vadd.f32 %v299_v51, %v298_v48 }
 0x206   :  { %v301_v54 = vadd.f32 %v300_v52, %v293_v53 }
 0x208   :  { %303 = vst.msk [vmem:[#allocation6] sm:$0x1] %vm59_vm3, %v301_v54 }
 0x20f   :  { %v309_v56 = vld [vmem:[#allocation6] sm:$0x1] }
 0x210   :  { %392 = vlog2.f32 %v309_v56 }
 0x21a   :  { %v393_v59 = vpop.eup %392 }
 0x21b   :  { %v311_v62 = vmul.f32 0.6931472, %v393_v59 }
 0x21d   :  { %v312_v2 = vadd.f32 %v311_v62, %v308_v0 }
 0x21f   :  { %v313_v3 = vsel %vm59_vm3, %v312_v2, 0.0 }
 0x267   :  { %v232_v55 = vpop.xlane.xlu1 %231 }
 0x268   :  { %v233_v57 = vsub.f32 %v143_v22, %v232_v55  ;;  %v229_v63 = vpop.xlane.xlu0 %228 }
 0x269   :  { %v244_v1 = vsel %vm243_vm6, %v229_v63, 0.0 }
 0x26a   :  { %v234_v58 = vmul.f32 1.442695, %v233_v57 }
 0x26c   :  { %394 = vpow2.f32 %v234_v58 }
 0x276   :  { %v395_v60 = vpop.eup %394 }
 0x277   :  { %v236_v61 = vsel %vm226_vm5, %v395_v60, 0.0 }
 0x278   :  { %237 = vadd.xlane.f32.xlu1 %v236_v61 }
 0x27c   :  { %245 = vadd.xlane.f32.xlu1 %v244_v1 }
 0x280   :  { %314 = vadd.xlane.f32.xlu1 %v313_v3 }
 0x305   :  { %v238_v4 = vpop.xlane.xlu1 %237 }
 0x306   :  { %396 = vlog2.f32 %v238_v4 }
 0x309   :  { %v246_v5 = vpop.xlane.xlu1 %245 }
 0x30a   :  { %v247_v6 = vrot.slane %v246_v5, 4 }
 0x30c   :  { %v248_v7 = vadd.f32 %v247_v6, %v246_v5 }
 0x30d   :  { %v315_v17 = vpop.xlane.xlu1 %314 }
 0x30e   :  { %v249_v8 = vrot.slane %v248_v7, 2  ;;  %v316_v18 = vrot.slane %v315_v17, 4 }
 0x310   :  { %v397_v9 = vpop.eup %396  ;;  %v250_v10 = vadd.f32 %v249_v8, %v248_v7  ;;  %v317_v19 = vadd.f32 %v316_v18, %v315_v17 }
 0x311   :  { %v240_v11 = vmul.f32 0.6931472, %v397_v9 }
 0x312   :  { %v251_v12 = vrot.slane %v250_v10, 1  ;;  %v318_v20 = vrot.slane %v317_v19, 2 }
 0x313   :  { %v241_v13 = vadd.f32 %v240_v11, %v232_v55 }
 0x314   :  { %v252_v14 = vadd.f32 %v251_v12, %v250_v10  ;;  %v319_v24 = vadd.f32 %v318_v20, %v317_v19 }
 0x315   :  { %v242_v15 = vsub.f32 %v241_v13, %v229_v63 }
 0x316   :  { %369 = vpush %v252_v14  ;;  %v320_v27 = vrot.slane %v319_v24, 1 }
 0x317   :  { %v255_v16 = vsel %vm243_vm6, %v242_v15, 0.0 }
 0x318   :  { %256 = vadd.xlane.f32.xlu0 %v255_v16  ;;  %v321_v30 = vadd.f32 %v320_v27, %v319_v24 }
 0x347   :  { %s370_s2 = spop %369 }
 0x3a5   :  { %v257_v21 = vpop.xlane.xlu0 %256 }
 0x3a6   :  { %v258_v22 = vrot.slane %v257_v21, 4 }
 0x3a8   :  { %v259_v23 = vadd.f32 %v258_v22, %v257_v21 }
 0x3aa   :  { %v260_v25 = vrot.slane %v259_v23, 2 }
 0x3ac   :  { %v261_v26 = vadd.f32 %v260_v25, %v259_v23 }
 0x3ae   :  { %v262_v28 = vrot.slane %v261_v26, 1 }
 0x3b0   :  { %v263_v29 = vadd.f32 %v262_v28, %v261_v26 }
 0x3b2   :  { %371 = vpush %v263_v29 }
 0x3b3   :  { %373 = vpush %v321_v30 }
 0x3e3   :  { %s372_s12 = spop %371 }
 0x3e4   :  { %s374_s13 = spop %373 }
 0x3e5   :  { %s325_s14 = ssub.f32 %s374_s13, %s370_s2 }
 0x3e7   :  { %s326_s15 = sadd.f32 %s372_s12, %s325_s14 }
 0x3e9   :  { %s327_s16 = smul.f32 0.0625, %s326_s15 }
 0x3eb   :  { %329 = sst [smem:[#allocation12]] %s327_s16 }
 0x3ec   :  { %451 = shalt.err (!%p448_p4)
}
 0x3ed   :  { %s464_s24 = smov [#allocation12]  }
 0x3ee   :  { %337 = dma.smem_to_hbm %s464_s24, 16, %s538_s3, [#allocation11]  }
 0x3ef   :  { %456 = dma.done.wait [#allocation11], 16  }
 0x3f0   :  { %457 = vsyncadd [#allocation11], 4294967280 }
 0x3f1   :  { %341 = sfence }
 0x3f2   :  { %342 = vsyncpa [#allocation10], 1 }
 0x3f3   :  { %343 = vsyncpa [#allocation11], 1 }
 0x3f4   :  { %344 = vsyncmov [#allocation4] }
 0x3f7   :  { %s345_s27 = vpop.sfrf %344 }
 0x3f8   :  { %p352_p5 = scmp.ne.s32.totalorder %s345_s27, 0 }
 0x3fa   :  { %349 = shalt.err (%p352_p5)  }

</bundles_post_ra>
